<compile_context>
chip_gen: v6e
topology: v6e:2x2x1
jax: 0.10.0
libtpu: 0.0.40
codegen_flags: <defaults>
</compile_context>

<pallas_src>
import functools

import jax
import jax.numpy as jnp
from jax.experimental import pallas as pl
from jax.experimental.pallas import tpu as pltpu


def _pow_abs(x, p):
    a = jnp.abs(x)
    if p == 1.0:
        return a
    if p == 2.0:
        return a * a
    return jnp.power(a, p)


def _at_kernel(s_ref, t_ref, out_ref, *, p, eps):
    # s_ref: (TB, Cs, HW) student tile, t_ref: (TB, Ct, HW) teacher tile,
    # out_ref: (TB, 1) per-feature-map sum of squared attention differences.
    s = s_ref[...].astype(jnp.float32)
    t = t_ref[...].astype(jnp.float32)

    # attention map: sum_c |fm|^p  ->  (TB, HW)
    am_s = jnp.sum(_pow_abs(s, p), axis=1)
    am_t = jnp.sum(_pow_abs(t, p), axis=1)

    # torch.norm(am, dim=(2,3)): Frobenius norm over spatial positions, per map
    norm_s = jnp.sqrt(jnp.sum(am_s * am_s, axis=1, keepdims=True))  # (TB, 1)
    norm_t = jnp.sqrt(jnp.sum(am_t * am_t, axis=1, keepdims=True))  # (TB, 1)

    # tiny per-row reciprocal + broadcast multiply instead of full-width divide
    inv_s = 1.0 / (norm_s + eps)
    inv_t = 1.0 / (norm_t + eps)

    d = am_s * inv_s - am_t * inv_t                                  # (TB, HW)
    out_ref[...] = jnp.sum(d * d, axis=1, keepdims=True)             # (TB, 1)


# Per-step input budget (both operands, one pipeline buffer).  Double-buffered
# inputs + f32 in-kernel temporaries stay well under every chip's scoped VMEM.
_IN_BYTES_BUDGET = 6 * 1024 * 1024


def _pick_batch_tile(B, per_map_bytes):
    """Largest batch tile within budget; TB must be == B or a multiple of 8 so
    the (TB, 1) output block satisfies the (8, 128) block-shape rule."""
    fit = max(1, _IN_BYTES_BUDGET // max(per_map_bytes, 1))
    if fit >= B:
        if B >= 16:
            # Keep >= 2 grid steps on the parallel axis so v7x's 2 TensorCores
            # both get work; on 1-TC chips the extra step costs ~nothing.
            return max(8, (((B + 1) // 2) + 7) // 8 * 8)
        return B
    if fit >= 8:
        return min((fit // 8) * 8, B)
    # Budget smaller than 8 maps: take the minimum legal tile and raise the
    # VMEM limit instead.  (Channel tiling would bound this further; see notes.)
    return B if B < 8 else 8


def _per_layer_sq_err(fm_s, fm_t, p, eps=1e-6):
    """mean((att(fm_s) - att(fm_t))^2) == F.mse_loss for one layer."""
    B, Cs, H, W = fm_s.shape
    Bt, Ct, Ht, Wt = fm_t.shape
    assert (B, H, W) == (Bt, Ht, Wt), "student/teacher batch/spatial dims must match"
    HW = H * W
    s2 = fm_s.reshape(B, Cs, HW)
    t2 = fm_t.reshape(B, Ct, HW)

    per_map_bytes = (Cs * s2.dtype.itemsize + Ct * t2.dtype.itemsize) * HW
    TB = _pick_batch_tile(B, per_map_bytes)
    grid = (pl.cdiv(B, TB),)

    # 2 inputs x 2 pipeline buffers + f32 in-kernel temporaries + margin.
    block_in_bytes = TB * per_map_bytes
    vmem_limit = int(min(max(4 * block_in_bytes + (4 << 20), 16 << 20), 96 << 20))

    kernel = functools.partial(_at_kernel, p=p, eps=eps)
    out = pl.pallas_call(
        kernel,
        out_shape=jax.ShapeDtypeStruct((B, 1), jnp.float32),
        grid_spec=pltpu.PrefetchScalarGridSpec(
            num_scalar_prefetch=0,
            grid=grid,
            in_specs=[
                pl.BlockSpec((TB, Cs, HW), lambda b: (b, 0, 0)),
                pl.BlockSpec((TB, Ct, HW), lambda b: (b, 0, 0)),
            ],
            out_specs=pl.BlockSpec((TB, 1), lambda b: (b, 0)),
        ),
        compiler_params=pltpu.CompilerParams(
            dimension_semantics=("parallel",),
            vmem_limit_bytes=vmem_limit,
        ),
    )(s2, t2)
    # F.mse_loss default reduction='mean' over the (B, 1, H, W) attention maps.
    return jnp.sum(out) / (B * HW)


def at_loss(fm_s_list, fm_t_list, p=2.0):
    """Pallas equivalent of AT(p).forward(fm_s_list, fm_t_list)."""
    losses = [_per_layer_sq_err(s, t, p) for s, t in zip(fm_s_list, fm_t_list)]
    return sum(losses) / len(losses)


# ----------------------------- pure-JAX reference ---------------------------
def _attention_map_ref(fm, p, eps=1e-6):
    am = jnp.power(jnp.abs(fm), p)
    am = jnp.sum(am, axis=1, keepdims=True)
    norm = jnp.sqrt(jnp.sum(am * am, axis=(2, 3), keepdims=True))
    return am / (norm + eps)


def at_loss_ref(fm_s_list, fm_t_list, p=2.0):
    total = 0.0
    for s, t in zip(fm_s_list, fm_t_list):
        total = total + jnp.mean(
            (_attention_map_ref(s, p) - _attention_map_ref(t, p)) ** 2)
    return total / len(fm_s_list)


if __name__ == "__main__":
    p = 2.0
    key = jax.random.PRNGKey(0)
    k0, k1, k2, k3 = jax.random.split(key, 4)

    # Two "stages" of feature maps; teacher has more channels (typical in KD),
    # spatial dims match within each stage.
    fm_s = [
        jax.random.normal(k0, (2, 4, 16, 16), dtype=jnp.float32),
        jax.random.normal(k1, (2, 4, 8, 8), dtype=jnp.float32),
    ]
    fm_t = [
        jax.random.normal(k2, (2, 8, 16, 16), dtype=jnp.float32),
        jax.random.normal(k3, (2, 8, 8, 8), dtype=jnp.float32),
    ]

    loss = jax.block_until_ready(at_loss(fm_s, fm_t, p=p))
    loss_ref = jax.block_until_ready(at_loss_ref(fm_s, fm_t, p=p))

    assert jnp.allclose(loss, loss_ref, rtol=1e-5, atol=1e-6), (loss, loss_ref)
    print("KERNEL_OK")
</pallas_src>

<mosaic_0001>
module attributes {stable_mosaic.version = 11 : i64} {
  func.func @_at_kernel(%arg0: i32, %arg1: memref<2x4x256xf32, #tpu.memory_space<vmem>>, %arg2: memref<2x8x256xf32, #tpu.memory_space<vmem>>, %arg3: memref<2x1xf32, #tpu.memory_space<vmem>>) attributes {dimension_semantics = [#tpu.dimension_semantics<parallel>], iteration_bounds = array<i64: 1>, scalar_prefetch = 0 : i64, scratch_operands = 0 : i64, tpu.core_type = #tpu.core_type<tc>, window_params = [{transform_indices = @transform_0, window_bounds = array<i64: 2, 4, 256>}, {transform_indices = @transform_1, window_bounds = array<i64: 2, 8, 256>}, {transform_indices = @transform_2, window_bounds = array<i64: 2, 1>}]} {
    %c0 = arith.constant 0 : index
    %c0_0 = arith.constant 0 : index
    %c0_1 = arith.constant 0 : index
    %0 = vector.load %arg1[%c0, %c0_0, %c0_1] : memref<2x4x256xf32, #tpu.memory_space<vmem>>, vector<2x4x256xf32>
    %c0_2 = arith.constant 0 : index
    %c0_3 = arith.constant 0 : index
    %c0_4 = arith.constant 0 : index
    %1 = vector.load %arg2[%c0_2, %c0_3, %c0_4] : memref<2x8x256xf32, #tpu.memory_space<vmem>>, vector<2x8x256xf32>
    %2 = math.absf %0 : vector<2x4x256xf32>
    %3 = arith.mulf %2, %2 : vector<2x4x256xf32>
    %cst = arith.constant dense<0.000000e+00> : vector<2x256xf32>
    %4 = vector.multi_reduction <add>, %3, %cst [1] : vector<2x4x256xf32> to vector<2x256xf32>
    %5 = math.absf %1 : vector<2x8x256xf32>
    %6 = arith.mulf %5, %5 : vector<2x8x256xf32>
    %cst_5 = arith.constant dense<0.000000e+00> : vector<2x256xf32>
    %7 = vector.multi_reduction <add>, %6, %cst_5 [1] : vector<2x8x256xf32> to vector<2x256xf32>
    %8 = arith.mulf %4, %4 : vector<2x256xf32>
    %cst_6 = arith.constant dense<0.000000e+00> : vector<2xf32>
    %9 = vector.multi_reduction <add>, %8, %cst_6 [1] : vector<2x256xf32> to vector<2xf32>
    %10 = vector.shape_cast %9 : vector<2xf32> to vector<2x1xf32>
    %11 = math.sqrt %10 : vector<2x1xf32>
    %12 = arith.mulf %7, %7 : vector<2x256xf32>
    %cst_7 = arith.constant dense<0.000000e+00> : vector<2xf32>
    %13 = vector.multi_reduction <add>, %12, %cst_7 [1] : vector<2x256xf32> to vector<2xf32>
    %14 = vector.shape_cast %13 : vector<2xf32> to vector<2x1xf32>
    %15 = math.sqrt %14 : vector<2x1xf32>
    %cst_8 = arith.constant 9.99999997E-7 : f32
    %16 = vector.broadcast %cst_8 : f32 to vector<2x1xf32>
    %17 = arith.addf %11, %16 : vector<2x1xf32>
    %cst_9 = arith.constant 1.000000e+00 : f32
    %18 = vector.broadcast %cst_9 : f32 to vector<2x1xf32>
    %19 = arith.divf %18, %17 : vector<2x1xf32>
    %cst_10 = arith.constant 9.99999997E-7 : f32
    %20 = vector.broadcast %cst_10 : f32 to vector<2x1xf32>
    %21 = arith.addf %15, %20 : vector<2x1xf32>
    %cst_11 = arith.constant 1.000000e+00 : f32
    %22 = vector.broadcast %cst_11 : f32 to vector<2x1xf32>
    %23 = arith.divf %22, %21 : vector<2x1xf32>
    %24 = vector.broadcast %19 : vector<2x1xf32> to vector<2x256xf32>
    %25 = arith.mulf %4, %24 : vector<2x256xf32>
    %26 = vector.broadcast %23 : vector<2x1xf32> to vector<2x256xf32>
    %27 = arith.mulf %7, %26 : vector<2x256xf32>
    %28 = arith.subf %25, %27 : vector<2x256xf32>
    %29 = arith.mulf %28, %28 : vector<2x256xf32>
    %cst_12 = arith.constant dense<0.000000e+00> : vector<2xf32>
    %30 = vector.multi_reduction <add>, %29, %cst_12 [1] : vector<2x256xf32> to vector<2xf32>
    %31 = vector.shape_cast %30 : vector<2xf32> to vector<2x1xf32>
    %c0_13 = arith.constant 0 : index
    %c0_14 = arith.constant 0 : index
    %32 = vector.load %arg3[%c0_13, %c0_14] : memref<2x1xf32, #tpu.memory_space<vmem>>, vector<2x1xf32>
    tpu.vector_store %arg3[%c0_13, %c0_14], %31 {strides = array<i32>} : memref<2x1xf32, #tpu.memory_space<vmem>>, vector<2x1xf32>,
    return
  }
  func.func @transform_0(%arg0: i32) -> (i32, i32, i32) {
    %c0_i32 = arith.constant 0 : i32
    %c0_i32_0 = arith.constant 0 : i32
    %c0_i32_1 = arith.constant 0 : i32
    return %arg0, %c0_i32, %c0_i32_0 : i32, i32, i32
  }
  func.func @transform_1(%arg0: i32) -> (i32, i32, i32) {
    %c0_i32 = arith.constant 0 : i32
    %c0_i32_0 = arith.constant 0 : i32
    %c0_i32_1 = arith.constant 0 : i32
    return %arg0, %c0_i32, %c0_i32_0 : i32, i32, i32
  }
  func.func @transform_2(%arg0: i32) -> (i32, i32) {
    %c0_i32 = arith.constant 0 : i32
    %c0_i32_0 = arith.constant 0 : i32
    return %arg0, %c0_i32 : i32, i32
  }
}

</mosaic_0001>

<bundles_post_ra>
// kernel: tpu_custom_call.1
= control target key start
LH: loop header
LB: loop body
LE: loop exit
PB: predicated region body
PF: predicated region fallthrough
CT: control target
= control target key end

     0   :  { %7 = vsyncpa [#allocation3], 0  ;;  %s323_s0 = inlined_call_operand.hbm [shape: f32[2,4,256], index: 0, kind: input, shape index: {}]   ;;  %s324_s1 = inlined_call_operand.hbm [shape: f32[2,8,256], index: 1, kind: input, shape index: {}]   ;;  %s325_s2 = inlined_call_operand.vmem [shape: f32[2,1], index: 2, kind: output, shape index: {}]  }
   0x1   :  { %8 = vsyncpa [#allocation5], 0  ;;  %s277_s9 = smov [#allocation2]  }
   0x2   :  { %s14_s10 = sshll.u32 %s277_s9, 4  ;;  %s15_s10 = int_to_ptr.vmem [resolvable:$true] %s14_s10 }
   0x3   :  { %s241_s11 = scalar_lea.vmem %s15_s10, 256  ;;  %p246_p1 = scmp.lt.s32.totalorder %s15_s10, %s15_s10 }
   0x4   :  { %p242_p0 = scmp.ne.s32.totalorder %s15_s10, %s241_s11  ;;  %p247_p2 = scmp.lt.s32.totalorder %s241_s11, %s241_s11 }
   0x6   :  { %p248_p3 = por %p247_p2, %p246_p1 }
   0x8   :  { %p249_p4 = pnand %p248_p3, %p242_p0 }
   0xa   :  { %252 = shalt.err (!%p249_p4)
}
   0xb   :  { %s278_s12 = smov 128   ;;  %s279_s13 = smov 8  }
   0xc   :  { %20 = dma.hbm_to_vmem [thread:$0]  %s323_s0, 256, %s15_s10, [#allocation3], %s278_s12, %s278_s12, %s279_s13  }
   0xd   :  { %s280_s16 = smov [#allocation4]  }
   0xe   :  { %s26_s17 = sshll.u32 %s280_s16, 4  ;;  %s27_s17 = int_to_ptr.vmem [resolvable:$true] %s26_s17 }
   0xf   :  { %s261_s18 = scalar_lea.vmem %s27_s17, 512  ;;  %p266_p6 = scmp.lt.s32.totalorder %s27_s17, %s27_s17 }
  0x10   :  { %p262_p5 = scmp.ne.s32.totalorder %s27_s17, %s261_s18  ;;  %p267_p7 = scmp.lt.s32.totalorder %s261_s18, %s261_s18 }
  0x12   :  { %p268_p8 = por %p267_p7, %p266_p6 }
  0x14   :  { %p269_p9 = pnand %p268_p8, %p262_p5 }
  0x16   :  { %272 = shalt.err (!%p269_p9)
}
  0x17   :  { %s281_s19 = smov 256   ;;  %s282_s20 = smov 16  }
  0x18   :  { %32 = dma.hbm_to_vmem [thread:$0]  %s324_s1, 512, %s27_s17, [#allocation5], %s281_s19, %s281_s19, %s282_s20  }
  0x19   :  { %273 = dma.done.wait [#allocation3], 256  }
  0x1a   :  { %274 = vsyncadd [#allocation3], 4294967040 }
  0x1b   :  { %275 = dma.done.wait [#allocation5], 512  }
  0x1c   :  { %276 = vsyncadd [#allocation5], 4294966784  ;;  %v39_v0 = vld [vmem:[#allocation2] sm:$0xff]  ;;  %v40_v1 = vld [vmem:[#allocation2 + $0x8] sm:$0xff]  ;;  %vm55_vm0 = vcmask 1043456   ;;  %vm124_vm1 = vcmask 1041409  }
  0x1d   :  { %v41_v2 = vld [vmem:[#allocation4] sm:$0xff]  ;;  %v45_v3 = vand.u32 2147483647, %v39_v0  ;;  %v46_v4 = vand.u32 2147483647, %v40_v1  ;;  %v42_v5 = vld [vmem:[#allocation4 + $0x8] sm:$0xff] }
  0x1e   :  { %v43_v6 = vld [vmem:[#allocation4 + $0x10] sm:$0xff]  ;;  %v44_v7 = vld [vmem:[#allocation4 + $0x18] sm:$0xff]  ;;  %v84_v8 = vand.u32 2147483647, %v41_v2  ;;  %v85_v9 = vand.u32 2147483647, %v42_v5 }
  0x1f   :  { %v47_v10 = vmul.f32 %v45_v3, %v45_v3  ;;  %v48_v11 = vmul.f32 %v46_v4, %v46_v4  ;;  %v86_v12 = vand.u32 2147483647, %v43_v6  ;;  %v87_v13 = vand.u32 2147483647, %v44_v7 }
  0x20   :  { %v88_v14 = vmul.f32 %v84_v8, %v84_v8  ;;  %v89_v15 = vmul.f32 %v85_v9, %v85_v9  ;;  %vm129_vm2 = vcmask 1041408   ;;  %vm211_vm7 = vcmask 1024  }
  0x21   :  { %v51_v16 = vcombine.high %v47_v10, %v47_v10  ;;  %v52_v17 = vcombine.high %v48_v11, %v48_v11  ;;  %v56_v18 = vsel %vm55_vm0, %v47_v10, 0.0  ;;  %v70_v19 = vsel %vm55_vm0, %v48_v11, 0.0 }
  0x22   :  { %v57_v20 = vrot.slane %v56_v18, 4  ;;  %v71_v21 = vrot.slane %v70_v19, 4  ;;  %v90_v22 = vmul.f32 %v86_v12, %v86_v12  ;;  %v91_v23 = vmul.f32 %v87_v13, %v87_v13 }
  0x23   :  { %v63_v24 = vsel %vm55_vm0, %v51_v16, 0.0  ;;  %v77_v25 = vsel %vm55_vm0, %v52_v17, 0.0  ;;  %v92_v26 = vrot.slane %v88_v14, 4  ;;  %v98_v27 = vrot.slane %v89_v15, 4 }
  0x24   :  { %v58_v28 = vadd.f32 %v57_v20, %v56_v18  ;;  %v64_v29 = vrot.slane %v63_v24, 4  ;;  %v72_v30 = vadd.f32 %v71_v21, %v70_v19  ;;  %v78_v31 = vrot.slane %v77_v25, 4 }
  0x25   :  { %v93_v32 = vadd.f32 %v92_v26, %v88_v14  ;;  %v99_v33 = vadd.f32 %v98_v27, %v89_v15  ;;  %v104_v34 = vrot.slane %v90_v22, 4  ;;  %v110_v35 = vrot.slane %v91_v23, 4 }
  0x26   :  { %v59_v36 = vrot.slane %v58_v28, 2  ;;  %v65_v37 = vadd.f32 %v64_v29, %v63_v24  ;;  %v73_v38 = vrot.slane %v72_v30, 2  ;;  %v79_v39 = vadd.f32 %v78_v31, %v77_v25 }
  0x27   :  { %v94_v40 = vrot.slane %v93_v32, 2  ;;  %v100_v41 = vrot.slane %v99_v33, 2  ;;  %v105_v42 = vadd.f32 %v104_v34, %v90_v22  ;;  %v111_v43 = vadd.f32 %v110_v35, %v91_v23 }
  0x28   :  { %v60_v44 = vadd.f32 %v59_v36, %v58_v28  ;;  %v66_v45 = vrot.slane %v65_v37, 2  ;;  %v74_v46 = vadd.f32 %v73_v38, %v72_v30  ;;  %v80_v47 = vrot.slane %v79_v39, 2 }
  0x29   :  { %v95_v48 = vadd.f32 %v94_v40, %v93_v32  ;;  %v101_v49 = vadd.f32 %v100_v41, %v99_v33  ;;  %v106_v50 = vrot.slane %v105_v42, 2  ;;  %v112_v51 = vrot.slane %v111_v43, 2 }
  0x2a   :  { %v61_v52 = vrot.slane %v60_v44, 1  ;;  %v67_v53 = vadd.f32 %v66_v45, %v65_v37  ;;  %v75_v54 = vrot.slane %v74_v46, 1  ;;  %v81_v55 = vadd.f32 %v80_v47, %v79_v39 }
  0x2b   :  { %v96_v56 = vrot.slane %v95_v48, 1  ;;  %v102_v57 = vrot.slane %v101_v49, 1  ;;  %v107_v58 = vadd.f32 %v106_v50, %v105_v42  ;;  %v113_v59 = vadd.f32 %v112_v51, %v111_v43 }
  0x2c   :  { %v62_v60 = vadd.f32 %v61_v52, %v60_v44  ;;  %v68_v61 = vrot.slane %v67_v53, 1  ;;  %v76_v62 = vadd.f32 %v75_v54, %v74_v46  ;;  %v82_v63 = vrot.slane %v81_v55, 1 }
  0x2d   :  { %v97_v0 = vadd.f32 %v96_v56, %v95_v48  ;;  %v103_v1 = vadd.f32 %v102_v57, %v101_v49  ;;  %v108_v2 = vrot.slane %v107_v58, 1  ;;  %v114_v3 = vrot.slane %v113_v59, 1 }
  0x2e   :  { %v69_v4 = vadd.f32 %v68_v61, %v67_v53  ;;  %v83_v5 = vadd.f32 %v82_v63, %v81_v55  ;;  %v116_v6 = vmul.f32 %v62_v60, %v62_v60  ;;  %v118_v7 = vmul.f32 %v76_v62, %v76_v62 }
  0x2f   :  { %v109_v8 = vadd.f32 %v108_v2, %v107_v58  ;;  %v115_v9 = vadd.f32 %v114_v3, %v113_v59  ;;  %v142_v10 = vmul.f32 %v97_v0, %v97_v0  ;;  %v143_v11 = vmul.f32 %v103_v1, %v103_v1 }
  0x30   :  { %v117_v12 = vmul.f32 %v69_v4, %v69_v4  ;;  %v119_v13 = vmul.f32 %v83_v5, %v83_v5  ;;  %v125_v14 = vsel %vm124_vm1, %v118_v7, %v116_v6 }
  0x31   :  { %v130_v15 = vsel %vm129_vm2, %v125_v14, 0.0  ;;  %v144_v16 = vmul.f32 %v109_v8, %v109_v8  ;;  %v145_v17 = vmul.f32 %v115_v9, %v115_v9 }
  0x32   :  { %v126_v18 = vsel %vm124_vm1, %v119_v13, %v117_v12 }
  0x33   :  { %v131_v19 = vsel %vm129_vm2, %v126_v18, 0.0  ;;  %v150_v20 = vsel %vm124_vm1, %v144_v16, %v142_v10  ;;  %v151_v21 = vsel %vm124_vm1, %v145_v17, %v143_v11 }
  0x34   :  { %v132_v22 = vadd.f32 %v131_v19, %v130_v15  ;;  %v154_v23 = vsel %vm129_vm2, %v150_v20, 0.0  ;;  %v155_v24 = vsel %vm129_vm2, %v151_v21, 0.0 }
  0x35   :  { %v156_v25 = vadd.f32 %v155_v24, %v154_v23 }
  0x36   :  { %133 = vadd.xlane.f32.xlu0 %v132_v22 }
  0x3a   :  { %157 = vadd.xlane.f32.xlu0 %v156_v25 }
  0xbf   :  { %v134_v26 = vpop.xlane.xlu0 %133 }
  0xc0   :  { %225 = vrsqrt.f32 %v134_v26  ;;  %vm137_vm3 = vcmp.eq.f32.partialorder %v134_v26, inf  ;;  %v140_v30 = vand.u32 2147483648, %v134_v26  ;;  %vm139_vm4 = vcmp.eq.f32.partialorder %v134_v26, 0.0 }
  0xc3   :  { %v158_v27 = vpop.xlane.xlu0 %157 }
  0xc4   :  { %227 = vrsqrt.f32 %v158_v27  ;;  %vm161_vm5 = vcmp.eq.f32.partialorder %v158_v27, inf  ;;  %v164_v36 = vand.u32 2147483648, %v158_v27  ;;  %vm163_vm6 = vcmp.eq.f32.partialorder %v158_v27, 0.0 }
  0xcd   :  { %v226_v28 = vpop.eup %225 }
  0xce   :  { %v136_v29 = vmul.f32 %v226_v28, %v134_v26 }
  0xd0   :  { %v138_v31 = vsel %vm137_vm3, %v134_v26, %v136_v29 }
  0xd1   :  { %v228_v32 = vpop.eup %227  ;;  %v141_v33 = vsel %vm139_vm4, %v140_v30, %v138_v31 }
  0xd2   :  { %v166_v34 = vadd.f32 1e-06, %v141_v33  ;;  %v160_v35 = vmul.f32 %v228_v32, %v158_v27 }
  0xd4   :  { %229 = vrcp.f32 %v166_v34  ;;  %v162_v37 = vsel %vm161_vm5, %v158_v27, %v160_v35 }
  0xd5   :  { %v165_v38 = vsel %vm163_vm6, %v164_v36, %v162_v37 }
  0xd6   :  { %v169_v39 = vadd.f32 1e-06, %v165_v38 }
  0xd8   :  { %231 = vrcp.f32 %v169_v39 }
  0xe1   :  { %v230_v40 = vpop.eup %229 }
  0xe2   :  { %v173_v41 = vrot.slane %v230_v40, 1  ;;  %v176_v46 = vmul.f32 %v230_v40, %v62_v60  ;;  %v177_v47 = vmul.f32 %v230_v40, %v69_v4 }
  0xe4   :  { %v178_v48 = vmul.f32 %v173_v41, %v76_v62  ;;  %v179_v49 = vmul.f32 %v173_v41, %v83_v5 }
  0xe5   :  { %v232_v42 = vpop.eup %231 }
  0xe6   :  { %v181_v43 = vrot.slane %v232_v42, 1  ;;  %v184_v44 = vmul.f32 %v232_v42, %v97_v0  ;;  %v185_v45 = vmul.f32 %v232_v42, %v103_v1 }
  0xe8   :  { %v186_v50 = vmul.f32 %v181_v43, %v109_v8  ;;  %v187_v51 = vmul.f32 %v181_v43, %v115_v9  ;;  %v188_v52 = vsub.f32 %v176_v46, %v184_v44  ;;  %v189_v53 = vsub.f32 %v177_v47, %v185_v45 }
  0xea   :  { %v190_v54 = vsub.f32 %v178_v48, %v186_v50  ;;  %v191_v55 = vsub.f32 %v179_v49, %v187_v51  ;;  %v192_v58 = vmul.f32 %v188_v52, %v188_v52  ;;  %v193_v59 = vmul.f32 %v189_v53, %v189_v53 }
  0xec   :  { %v194_v56 = vmul.f32 %v190_v54, %v190_v54  ;;  %v195_v57 = vmul.f32 %v191_v55, %v191_v55 }
  0xee   :  { %v200_v61 = vrot.slane %v194_v56, 7  ;;  %v202_v63 = vrot.slane %v195_v57, 7 }
  0xf0   :  { %v201_v2 = vsel %vm124_vm1, %v200_v61, %v192_v58  ;;  %v203_v0 = vsel %vm124_vm1, %v202_v63, %v193_v59 }
  0xf1   :  { %v206_v60 = vsel %vm129_vm2, %v201_v2, 0.0  ;;  %v207_v62 = vsel %vm129_vm2, %v203_v0, 0.0 }
  0xf2   :  { %v208_v1 = vadd.f32 %v207_v62, %v206_v60 }
  0xf4   :  { %209 = vadd.xlane.f32.xlu1 %v208_v1 }
 0x17d   :  { %v210_v3 = vpop.xlane.xlu1 %209 }
 0x17e   :  { %212 = vst.msk [vmem:[%s325_s2] sm:$0x3] %vm211_vm7, %v210_v3 }
 0x17f   :  { %217 = vsyncpa [#allocation3], 1 }
 0x180   :  { %218 = vsyncpa [#allocation5], 1 }

</bundles_post_ra>
